<compile_context>
chip_gen: v7x
topology: tpu7x:2x2x1
jax: 0.10.0
libtpu: 0.0.40
codegen_flags: <defaults>
</compile_context>

<pallas_src>
import math

import jax
import jax.numpy as jnp
from jax.experimental import pallas as pl
from jax.experimental.pallas import tpu as pltpu

LANE = 128  # TPU lane width: padded feature dims are multiples of 128


def _round_up(x, m):
    return (x + m - 1) // m * m


def _cdiv(a, b):
    return (a + b - 1) // b


# ---------------------------------------------------------------------------
# Kernels
# ---------------------------------------------------------------------------

def mlp_fused_kernel(x_ref, w1_ref, b1_ref, w2_ref, b2_ref, o_ref):
    """tanh(tanh(x @ w1 + b1) @ w2 + b2) with the whole hidden dim resident."""
    # In-kernel cast of the x tile to the MXU operand dtype (no-op for f32,
    # VPU-cheap for bf16); avoids a separate wrapper-side astype pass over x.
    xv = x_ref[...].astype(w1_ref.dtype)
    h = jnp.dot(xv, w1_ref[...], preferred_element_type=jnp.float32)
    h = jnp.tanh(h + b1_ref[...])                     # bias-add + tanh stay f32
    y = jnp.dot(h.astype(w2_ref.dtype), w2_ref[...],
                preferred_element_type=jnp.float32)
    # TODO(synk): if a bundle dump ever shows this MXU-bound with tiny d_out,
    # benchmark a 128-padded (lane-dense) output tile against this masked store.
    o_ref[...] = jnp.tanh(y + b2_ref[...]).astype(o_ref.dtype)


def mlp_hidden_tiled_kernel(x_ref, w1_ref, b1_ref, w2_ref, b2_ref, o_ref,
                            acc_ref):
    """Same computation with the hidden axis tiled on grid axis 1.

    Exact: tanh is applied per hidden chunk (hidden units are independent
    through layer 1), and layer 2's contraction over hidden is accumulated
    in an f32 VMEM scratch.
    """
    k = pl.program_id(1)

    @pl.when(k == 0)
    def _():
        acc_ref[...] = jnp.zeros_like(acc_ref)

    xv = x_ref[...].astype(w1_ref.dtype)
    h = jnp.dot(xv, w1_ref[...], preferred_element_type=jnp.float32)
    h = jnp.tanh(h + b1_ref[...])
    acc_ref[...] += jnp.dot(h.astype(w2_ref.dtype), w2_ref[...],
                            preferred_element_type=jnp.float32)

    @pl.when(k == pl.num_programs(1) - 1)
    def _():
        o_ref[...] = jnp.tanh(acc_ref[...] + b2_ref[...]).astype(o_ref.dtype)


# ---------------------------------------------------------------------------
# Wrapper helpers
# ---------------------------------------------------------------------------

def _block_spec(shape, index_map, buffer_count=None):
    """BlockSpec, optionally with explicit buffering (single-buffer residents)."""
    if buffer_count is None:
        return pl.BlockSpec(shape, index_map)
    try:
        return pl.BlockSpec(shape, index_map,
                            pipeline_mode=pl.Buffered(buffer_count))
    except (TypeError, AttributeError):
        # TODO(synk): pipeline_mode unavailable on this jax; fall back to the
        # default double-buffering (2x VMEM for the resident weights).
        return pl.BlockSpec(shape, index_map)


def _vmem_limit_bytes(vmem_need):
    cap = 64 << 20                          # conservative default = v7x capacity
    try:
        info = pltpu.get_tpu_info()
        cap = int(getattr(info, "vmem_capacity_bytes", cap) or cap)
    except Exception:
        pass
    ceiling = max(32 << 20, cap - (16 << 20))       # leave compiler headroom
    return int(min(max(vmem_need + (2 << 20), 32 << 20), ceiling))


def _pick_batch_tile(batch, row_align, x_row_bytes, *, min_steps=4,
                     max_rows=2048, tile_bytes_cap=2 << 20):
    """Batch tile: >= min_steps grid steps when the batch allows (v7x: 2 TCs
    each with >= 2 pipelined steps), capped so the x tile stays under ~2 MiB."""
    if batch <= row_align:
        return row_align
    cap = min(max_rows, max(row_align, tile_bytes_cap // max(1, x_row_bytes)))
    cap = max(row_align, cap // row_align * row_align)
    tm = _round_up(_cdiv(batch, min_steps), row_align)
    return max(row_align, min(tm, cap))


def _pick_hidden_tile(h_p, requested=None, max_tile=512):
    """Largest multiple of 128 that divides h_p and is <= requested/max_tile."""
    blocks = h_p // LANE
    cand = min(h_p, max_tile) if requested is None else max(LANE, requested)
    cand_blocks = max(1, min(cand // LANE, blocks))
    for k in range(cand_blocks, 0, -1):
        if blocks % k == 0:
            return k * LANE
    return LANE


# ---------------------------------------------------------------------------
# Public API
# ---------------------------------------------------------------------------

def prepare_mlp_params(w1, b1, w2, b2, *, mxu_dtype=None):
    """One-time parameter packing (hoisted out of the per-call path).

    w1: (d_in, hidden)  (PyTorch layer0.weight.T)    b1: (hidden,)
    w2: (hidden, d_out) (PyTorch layer1.weight.T)    b2: (d_out,)

    Pads hidden to a multiple of 128 (exact: zero w1 cols + zero b1 bias ->
    tanh(0)=0 -> zero w2 rows) and optionally casts the weights to the MXU
    operand dtype (e.g. bf16 on v6e/v7x). Biases stay f32 for the VPU/EUP.
    """
    d_in, hidden = w1.shape
    h_p = _round_up(hidden, LANE)
    wdt = mxu_dtype if mxu_dtype is not None else w1.dtype
    w1_p = jnp.pad(jnp.asarray(w1, wdt), ((0, 0), (0, h_p - hidden)))
    w2_p = jnp.pad(jnp.asarray(w2, wdt), ((0, h_p - hidden), (0, 0)))
    b1_p = jnp.pad(jnp.asarray(b1, jnp.float32).reshape(1, -1),
                   ((0, 0), (0, h_p - hidden)))
    b2_p = jnp.asarray(b2, jnp.float32).reshape(1, -1)
    return w1_p, b1_p, w2_p, b2_p


def mlp_layers_forward(x, params, *, out_dtype=None, hidden_tile=None,
                       resident_weight_limit_bytes=24 << 20):
    """Fused MLPlayers forward: tanh(tanh(x @ w1 + b1) @ w2 + b2).

    x      : (B, d_in), any float dtype (cast to the weight dtype in-kernel).
    params : output of prepare_mlp_params().
    hidden_tile : force hidden-axis tiling with this tile (multiple of 128);
        by default tiling triggers only when the resident weights would not
        comfortably fit VMEM (large hidden dims, especially on v7x).
    """
    w1, b1, w2, b2 = params
    B, d_in = x.shape
    h_p = w1.shape[1]
    d_out = w2.shape[1]
    out_dtype = out_dtype or x.dtype

    itemsize = jnp.dtype(x.dtype).itemsize
    w_itemsize = jnp.dtype(w1.dtype).itemsize
    o_itemsize = jnp.dtype(out_dtype).itemsize

    row_align = 8 * max(1, 4 // itemsize)     # 8 rows for 32-bit, 16 for 16-bit
    tm = _pick_batch_tile(B, row_align, d_in * itemsize)
    num_batch_tiles = _cdiv(B, tm)            # partial trailing block is masked

    weight_bytes = (d_in * h_p + h_p * d_out) * w_itemsize
    cost = pl.CostEstimate(
        flops=2 * B * (d_in * h_p + h_p * d_out),
        transcendentals=B * (h_p + d_out),
        bytes_accessed=int(B * d_in * itemsize + weight_bytes
                           + (h_p + d_out) * 4 + B * d_out * o_itemsize),
    )
    out_shape = jax.ShapeDtypeStruct((B, d_out), out_dtype)

    use_hidden_tiling = (hidden_tile is not None
                         or weight_bytes > resident_weight_limit_bytes)

    if not use_hidden_tiling:
        # Whole hidden dim resident: weights/biases DMA'd once, single-buffered.
        vmem_need = (2 * tm * d_in * itemsize          # double-buffered x tiles
                     + 2 * tm * d_out * o_itemsize     # double-buffered out tiles
                     + weight_bytes                    # single-buffered weights
                     + (h_p + d_out) * 4)              # biases (f32)
        return pl.pallas_call(
            mlp_fused_kernel,
            out_shape=out_shape,
            grid_spec=pltpu.PrefetchScalarGridSpec(
                num_scalar_prefetch=0,
                grid=(num_batch_tiles,),
                in_specs=[
                    pl.BlockSpec((tm, d_in), lambda i: (i, 0)),      # x tile
                    _block_spec((d_in, h_p), lambda i: (0, 0), 1),   # w1 resident
                    _block_spec((1, h_p), lambda i: (0, 0), 1),      # b1 resident
                    _block_spec((h_p, d_out), lambda i: (0, 0), 1),  # w2 resident
                    _block_spec((1, d_out), lambda i: (0, 0), 1),    # b2 resident
                ],
                out_specs=pl.BlockSpec((tm, d_out), lambda i: (i, 0)),
            ),
            compiler_params=pltpu.CompilerParams(
                dimension_semantics=("parallel",),
                vmem_limit_bytes=_vmem_limit_bytes(vmem_need)),
            cost_estimate=cost,
        )(x, w1, b1, w2, b2)

    # Fallback: tile the hidden axis so large hidden dims stay within VMEM
    # (v7x: 64 MiB). The x tile stays resident across hidden steps.
    th = _pick_hidden_tile(h_p, hidden_tile)
    num_h_tiles = h_p // th
    # TODO(synk): if a real config is MXU-bound, round th / d_out to 256 on
    # v6e/v7x (2x256x256 MXU); also tile d_in/d_out for extremely wide layers.
    vmem_need = (2 * tm * d_in * itemsize
                 + 2 * tm * d_out * o_itemsize
                 + 2 * (d_in * th + th * d_out) * w_itemsize
                 + 2 * th * 4 + d_out * 4
                 + tm * d_out * 4)                      # f32 accumulator scratch
    return pl.pallas_call(
        mlp_hidden_tiled_kernel,
        out_shape=out_shape,
        grid_spec=pltpu.PrefetchScalarGridSpec(
            num_scalar_prefetch=0,
            grid=(num_batch_tiles, num_h_tiles),
            in_specs=[
                pl.BlockSpec((tm, d_in), lambda i, k: (i, 0)),    # x (resident over k)
                pl.BlockSpec((d_in, th), lambda i, k: (0, k)),    # w1 chunk
                pl.BlockSpec((1, th), lambda i, k: (0, k)),       # b1 chunk
                pl.BlockSpec((th, d_out), lambda i, k: (k, 0)),   # w2 chunk
                _block_spec((1, d_out), lambda i, k: (0, 0), 1),  # b2 (constant)
            ],
            out_specs=pl.BlockSpec((tm, d_out), lambda i, k: (i, 0)),
            scratch_shapes=[pltpu.VMEM((tm, d_out), jnp.float32)],
        ),
        compiler_params=pltpu.CompilerParams(
            dimension_semantics=("parallel", "arbitrary"),
            vmem_limit_bytes=_vmem_limit_bytes(vmem_need)),
        cost_estimate=cost,
    )(x, w1, b1, w2, b2)


def init_linear_params(key, in_dim, out_dim, dtype=jnp.float32):
    """PyTorch nn.Linear default init: U(-1/sqrt(in_dim), 1/sqrt(in_dim)).
    Weight is stored pre-transposed as (in_dim, out_dim) (= W.T)."""
    kw, kb = jax.random.split(key)
    bound = 1.0 / math.sqrt(in_dim)
    w = jax.random.uniform(kw, (in_dim, out_dim), dtype, -bound, bound)
    b = jax.random.uniform(kb, (out_dim,), dtype, -bound, bound)
    return w, b


if __name__ == "__main__":
    key = jax.random.PRNGKey(0)
    kx1, kx2, kx3, k1, k2, k3, k4 = jax.random.split(key, 7)

    # ---- config 1: default small dims, f32, evenly-divided batch -----------
    batch, d_in, hidden, d_out = 16, 32, 32, 16
    x = jax.random.normal(kx1, (batch, d_in), jnp.float32)
    w1, b1 = init_linear_params(k1, d_in, hidden)
    w2, b2 = init_linear_params(k2, hidden, d_out)
    ref = jnp.tanh(jnp.tanh(x @ w1 + b1) @ w2 + b2)

    params = prepare_mlp_params(w1, b1, w2, b2)        # pad/cast once at init
    out = jax.block_until_ready(mlp_layers_forward(x, params))
    assert out.shape == (batch, d_out)
    assert jnp.allclose(out, ref, atol=1e-5, rtol=1e-5), "f32 mismatch"

    # ---- config 2: ragged batch -> partial trailing block (masked stores) ---
    xr = jax.random.normal(kx2, (50, d_in), jnp.float32)
    refr = jnp.tanh(jnp.tanh(xr @ w1 + b1) @ w2 + b2)
    outr = jax.block_until_ready(mlp_layers_forward(xr, params))
    assert outr.shape == (50, d_out)
    assert jnp.allclose(outr, refr, atol=1e-5, rtol=1e-5), "ragged-batch mismatch"

    # ---- config 3: bf16 MXU operands (weights cast once; x cast in-kernel) --
    params_bf16 = prepare_mlp_params(w1, b1, w2, b2, mxu_dtype=jnp.bfloat16)
    out_bf16 = jax.block_until_ready(mlp_layers_forward(x, params_bf16))
    assert out_bf16.shape == (batch, d_out)
    assert jnp.allclose(out_bf16, ref, atol=3e-2, rtol=3e-2), "bf16 mismatch"

    # ---- config 4: hidden-axis tiling fallback (forced for coverage) --------
    batch2, d_in2, hidden2, d_out2 = 24, 64, 256, 32
    x2 = jax.random.normal(kx3, (batch2, d_in2), jnp.float32)
    w1b, b1b = init_linear_params(k3, d_in2, hidden2)
    w2b, b2b = init_linear_params(k4, hidden2, d_out2)
    ref2 = jnp.tanh(jnp.tanh(x2 @ w1b + b1b) @ w2b + b2b)
    params2 = prepare_mlp_params(w1b, b1b, w2b, b2b)
    out2 = jax.block_until_ready(
        mlp_layers_forward(x2, params2, hidden_tile=128))
    assert out2.shape == (batch2, d_out2)
    assert jnp.allclose(out2, ref2, atol=1e-5, rtol=1e-5), "hidden-tiled mismatch"

    print("KERNEL_OK")
</pallas_src>

<mosaic_0001>
module attributes {stable_mosaic.version = 11 : i64} {
  func.func @mlp_fused_kernel(%arg0: i32, %arg1: memref<8x32xf32, #tpu.memory_space<vmem>>, %arg2: memref<32x128xf32, #tpu.memory_space<vmem>>, %arg3: memref<1x128xf32, #tpu.memory_space<vmem>>, %arg4: memref<128x16xf32, #tpu.memory_space<vmem>>, %arg5: memref<1x16xf32, #tpu.memory_space<vmem>>, %arg6: memref<8x16xf32, #tpu.memory_space<vmem>>) attributes {dimension_semantics = [#tpu.dimension_semantics<parallel>], iteration_bounds = array<i64: 2>, scalar_prefetch = 0 : i64, scratch_operands = 0 : i64, tpu.core_type = #tpu.core_type<tc>, window_params = [{transform_indices = @transform_0, window_bounds = array<i64: 8, 32>}, {pipeline_mode = #tpu.pipeline_mode<synchronous>, transform_indices = @transform_1, window_bounds = array<i64: 32, 128>}, {pipeline_mode = #tpu.pipeline_mode<synchronous>, transform_indices = @transform_2, window_bounds = array<i64: 1, 128>}, {pipeline_mode = #tpu.pipeline_mode<synchronous>, transform_indices = @transform_3, window_bounds = array<i64: 128, 16>}, {pipeline_mode = #tpu.pipeline_mode<synchronous>, transform_indices = @transform_4, window_bounds = array<i64: 1, 16>}, {transform_indices = @transform_5, window_bounds = array<i64: 8, 16>}]} {
    %c0 = arith.constant 0 : index
    %c0_0 = arith.constant 0 : index
    %0 = vector.load %arg1[%c0, %c0_0] : memref<8x32xf32, #tpu.memory_space<vmem>>, vector<8x32xf32>
    %c0_1 = arith.constant 0 : index
    %c0_2 = arith.constant 0 : index
    %1 = vector.load %arg2[%c0_1, %c0_2] : memref<32x128xf32, #tpu.memory_space<vmem>>, vector<32x128xf32>
    %cst = arith.constant dense<0.000000e+00> : vector<8x128xf32>
    %2 = tpu.matmul %0, %1, %cst {dimension_numbers = #tpu.dot_dimension_numbers<[1], [0], [0], [1], [0, 0, 1, 1], [], []>} : vector<8x32xf32>, vector<32x128xf32>, vector<8x128xf32> -> vector<8x128xf32>
    %c0_3 = arith.constant 0 : index
    %c0_4 = arith.constant 0 : index
    %3 = vector.load %arg3[%c0_3, %c0_4] : memref<1x128xf32, #tpu.memory_space<vmem>>, vector<1x128xf32>
    %4 = vector.broadcast %3 : vector<1x128xf32> to vector<8x128xf32>
    %5 = arith.addf %2, %4 : vector<8x128xf32>
    %6 = math.tanh %5 : vector<8x128xf32>
    %c0_5 = arith.constant 0 : index
    %c0_6 = arith.constant 0 : index
    %7 = vector.load %arg4[%c0_5, %c0_6] : memref<128x16xf32, #tpu.memory_space<vmem>>, vector<128x16xf32>
    %cst_7 = arith.constant dense<0.000000e+00> : vector<8x16xf32>
    %8 = tpu.matmul %6, %7, %cst_7 {dimension_numbers = #tpu.dot_dimension_numbers<[1], [0], [0], [1], [0, 0, 1, 1], [], []>} : vector<8x128xf32>, vector<128x16xf32>, vector<8x16xf32> -> vector<8x16xf32>
    %c0_8 = arith.constant 0 : index
    %c0_9 = arith.constant 0 : index
    %9 = vector.load %arg5[%c0_8, %c0_9] : memref<1x16xf32, #tpu.memory_space<vmem>>, vector<1x16xf32>
    %10 = vector.broadcast %9 : vector<1x16xf32> to vector<8x16xf32>
    %11 = arith.addf %8, %10 : vector<8x16xf32>
    %12 = math.tanh %11 : vector<8x16xf32>
    %c0_10 = arith.constant 0 : index
    %c0_11 = arith.constant 0 : index
    %13 = vector.load %arg6[%c0_10, %c0_11] : memref<8x16xf32, #tpu.memory_space<vmem>>, vector<8x16xf32>
    tpu.vector_store %arg6[%c0_10, %c0_11], %12 {strides = array<i32>} : memref<8x16xf32, #tpu.memory_space<vmem>>, vector<8x16xf32>,
    return
  }
  func.func @transform_0(%arg0: i32) -> (i32, i32) {
    %c0_i32 = arith.constant 0 : i32
    %c0_i32_0 = arith.constant 0 : i32
    return %arg0, %c0_i32 : i32, i32
  }
  func.func @transform_1(%arg0: i32) -> (i32, i32) {
    %c0_i32 = arith.constant 0 : i32
    %c0_i32_0 = arith.constant 0 : i32
    %c0_i32_1 = arith.constant 0 : i32
    return %c0_i32, %c0_i32_0 : i32, i32
  }
  func.func @transform_2(%arg0: i32) -> (i32, i32) {
    %c0_i32 = arith.constant 0 : i32
    %c0_i32_0 = arith.constant 0 : i32
    %c0_i32_1 = arith.constant 0 : i32
    return %c0_i32, %c0_i32_0 : i32, i32
  }
  func.func @transform_3(%arg0: i32) -> (i32, i32) {
    %c0_i32 = arith.constant 0 : i32
    %c0_i32_0 = arith.constant 0 : i32
    %c0_i32_1 = arith.constant 0 : i32
    return %c0_i32, %c0_i32_0 : i32, i32
  }
  func.func @transform_4(%arg0: i32) -> (i32, i32) {
    %c0_i32 = arith.constant 0 : i32
    %c0_i32_0 = arith.constant 0 : i32
    %c0_i32_1 = arith.constant 0 : i32
    return %c0_i32, %c0_i32_0 : i32, i32
  }
  func.func @transform_5(%arg0: i32) -> (i32, i32) {
    %c0_i32 = arith.constant 0 : i32
    %c0_i32_0 = arith.constant 0 : i32
    return %arg0, %c0_i32 : i32, i32
  }
}

</mosaic_0001>

<bundles_post_ra>
// kernel: tpu_custom_call.1
= control target key start
LH: loop header
LB: loop body
LE: loop exit
PB: predicated region body
PF: predicated region fallthrough
CT: control target
= control target key end

     0   :  { %10 = vsyncpa [#allocation3], 0  ;;  %s897_s0 = inlined_call_operand.vmem [shape: f32[16,32], index: 0, kind: input, shape index: {}]   ;;  %s898_s1 = inlined_call_operand.vmem [shape: f32[32,128], index: 1, kind: input, shape index: {}]   ;;  %s899_s2 = inlined_call_operand.vmem [shape: f32[1,128], index: 2, kind: input, shape index: {}]   ;;  %s900_s3 = inlined_call_operand.vmem [shape: f32[128,16], index: 3, kind: input, shape index: {}]   ;;  %s901_s4 = inlined_call_operand.vmem [shape: f32[1,16], index: 4, kind: input, shape index: {}]   ;;  %s902_s5 = inlined_call_operand.hbm [shape: f32[16,16], index: 5, kind: output, shape index: {}]  }
   0x1   :  { %12 = vsyncpa [#allocation3 + $0x1], 0  ;;  %s731_s18 = smov 0   ;;  %s733_s19 = smov 0  }
   0x2   :  { %s735_s20 = smov 0   ;;  %s737_s21 = smov 0  }
   0x3 LB: > { %s752_s22 = sadd.s32 4294967295, %s695_s21   ;;  %s476_s23 = sadd.s32 4294967294, %s695_s21   ;;  %s695_s21 = sphi %s737_s21, %s908_s21   ;;  %s691_s20 = sphi %s735_s20, %s907_s20   ;;  %s687_s19 = sphi %s733_s19, %s906_s19   ;;  %s683_s18 = sphi %s731_s18, %s905_s18  }
   0x4   : > { %s756_s24 = sadd.s32 1, %s695_s21   ;;  %s135_s25 = sadd.s32 1, %s691_s20 }
   0x5   : > { %s132_s26 = ssub.s32 %s695_s21, %s756_s24  ;;  %p145_p0 = scmp.ne.s32.totalorder %s691_s20, %s687_s19 }
   0x6   : > { %p133_p1 = scmp.eq.s32.totalorder %s132_s26, 0  ;;  %p146_p2 = scmp.eq.s32.totalorder %s752_s22, 1 }
   0x7   : > { %p151_p3 = scmp.ne.s32.totalorder %s687_s19, %s683_s18  ;;  %p152_p4 = scmp.eq.s32.totalorder %s476_s23, 1 }
   0x8   : > { %s767_s27 = scalar_select %p133_p1, %s691_s20, %s135_s25  }
   0x9   : > { %p769_p5 = por %p146_p2, %p145_p0  ;;  %p773_p6 = por %p152_p4, %p151_p3 }
   0xa   : > { %p479_p7 = scmp.ge.s32.totalorder %s695_s21, 1  ;;  %p189_p8 = scmp.lt.s32.totalorder %s695_s21, 3 }
   0xc   : > { %p190_p9 = pnand %p479_p7, %p189_p8 }
   0xd   : > { %v221_v0 = vld [vmem:[%s898_s1] sm:$0xff] (!%p190_p9)  ;;  %v222_v1 = vld [vmem:[%s898_s1 + $0x8] sm:$0xff] (!%p190_p9)  ;;  %v223_v2 = vld [vmem:[%s898_s1 + $0x10] sm:$0xff] (!%p190_p9)  ;;  %v697_v3 = vmov (!%p190_p9), 0.0|0.0   ;;  %vm698_vm0 = vmmov (!%p190_p9), 0   ;;  %v699_v6 = vmov (!%p190_p9), 0.0  }
   0xe   : > { %193 = sbr.rel (%p190_p9) target bundleno = 490 (0x1ea), region = 40  ;;  %557 = vmatprep.subr.bf16.mxu0 (!%p190_p9), %v697_v3  ;;  %v558_v4 = vpack.c.bf16 (!%p190_p9), %v222_v1, %v221_v0  ;;  %v224_v5 = vld [vmem:[%s898_s1 + $0x18] sm:$0xff] (!%p190_p9)  ;;  %519 = vmatprep.mubr.msk.f32.mxu0 (!%p190_p9), %vm698_vm0, %v699_v6  ;;  %p216_p10 = scmp.lt.s32.totalorder (!%p190_p9), %s752_s22, 1  ;;  %v307_v7 = vld [vmem:[%s900_s3] sm:$0xff] (!%p190_p9)  ;;  %v308_v8 = vld [vmem:[%s900_s3 + $0x8] sm:$0xff] (!%p190_p9)  ;;  %vm232_vm1 = vcmask (!%p190_p9), 261120  }
   0xf   : > { %563 = vmatprep.subr.bf16.mxu1 (!%p190_p9), %v697_v3  ;;  %v564_v9 = vpack.c.bf16 (!%p190_p9), %v308_v8, %v307_v7  ;;  %v309_v10 = vld [vmem:[%s900_s3 + $0x10] sm:$0xff] (!%p190_p9)  ;;  %v310_v11 = vld [vmem:[%s900_s3 + $0x18] sm:$0xff] (!%p190_p9)  ;;  %554 = vmatprep.mubr.msk.f32.mxu1 (!%p190_p9), %vm698_vm0, %v699_v6  ;;  %v561_v12 = vpack.c.bf16 (!%p190_p9), %v224_v5, %v223_v2  ;;  %v311_v14 = vld [vmem:[%s900_s3 + $0x20] sm:$0xff] (!%p190_p9)  ;;  %s486_s8 = sshll.u32 (!%p190_p9), %s752_s22, 7  ;;  %vm401_vm2 = vcmask (!%p190_p9), 130048  }
  0x10   : > { %559 = vmatpush3.bf16.msra.mxu0 (!%p190_p9), %v558_v4  ;;  %v567_v13 = vpack.c.bf16 (!%p190_p9), %v310_v11, %v309_v10  ;;  %v312_v15 = vld [vmem:[%s900_s3 + $0x28] sm:$0xff] (!%p190_p9)  ;;  %v313_v18 = vld [vmem:[%s900_s3 + $0x30] sm:$0xff] (!%p190_p9)  ;;  %v314_v19 = vld [vmem:[%s900_s3 + $0x38] sm:$0xff] (!%p190_p9) }
  0x11   : > { %560 = vmatprep.subr.bf16.mxu0 (!%p190_p9), %v697_v3  ;;  %565 = vmatpush3.bf16.msra.mxu1 (!%p190_p9), %v564_v9  ;;  %v570_v17 = vpack.c.bf16 (!%p190_p9), %v312_v15, %v311_v14  ;;  %v573_v20 = vpack.c.bf16 (!%p190_p9), %v314_v19, %v313_v18  ;;  %v315_v21 = vld [vmem:[%s900_s3 + $0x40] sm:$0xff] (!%p190_p9)  ;;  %v316_v22 = vld [vmem:[%s900_s3 + $0x48] sm:$0xff] (!%p190_p9)  ;;  %v317_v24 = vld [vmem:[%s900_s3 + $0x50] sm:$0xff] (!%p190_p9) }
  0x12   : > { %566 = vmatprep.subr.bf16.mxu1 (!%p190_p9), %v697_v3  ;;  %v576_v23 = vpack.c.bf16 (!%p190_p9), %v316_v22, %v315_v21  ;;  %v318_v25 = vld [vmem:[%s900_s3 + $0x58] sm:$0xff] (!%p190_p9)  ;;  %v319_v27 = vld [vmem:[%s900_s3 + $0x60] sm:$0xff] (!%p190_p9)  ;;  %v320_v28 = vld [vmem:[%s900_s3 + $0x68] sm:$0xff] (!%p190_p9) }
  0x13   : > { %v579_v26 = vpack.c.bf16 (!%p190_p9), %v318_v25, %v317_v24  ;;  %v582_v29 = vpack.c.bf16 (!%p190_p9), %v320_v28, %v319_v27  ;;  %v321_v30 = vld [vmem:[%s900_s3 + $0x70] sm:$0xff] (!%p190_p9)  ;;  %v322_v31 = vld [vmem:[%s900_s3 + $0x78] sm:$0xff] (!%p190_p9)  ;;  %v482_v33 = vld [vmem:[%s899_s2] ss:$0 sm:$0xff] (!%p190_p9) }
  0x14   : > { %562 = vmatpush3.bf16.msra.mxu0 (!%p190_p9), %v561_v12  ;;  %v585_v32 = vpack.c.bf16 (!%p190_p9), %v322_v31, %v321_v30  ;;  %v484_v38 = vld [vmem:[%s901_s4] ss:$0 sm:$0xff] (!%p190_p9) }
  0x15   : > { %s217_s30 = scalar_select %p216_p10, %s752_s22, 1  ;;  %568 = vmatpush3.bf16.msra.mxu1 %v567_v13 }
  0x16   : > { %569 = vmatprep.subr.bf16.mxu1 %v697_v3  ;;  %s700_s22 = smov [#allocation2]  }
  0x17   : > { %s481_s6 = sshll.u32 %s217_s30, 3  ;;  %s637_s16 = sshll.u32 %s700_s22, 4  ;;  %s638_s16 = int_to_ptr.vmem [resolvable:$false] %s637_s16 }
  0x18   : > { %s219_s13 = scalar_lea.vmem %s897_s0, %s481_s6  ;;  %s213_s6 = sand.u32 1, %s687_s19  }
  0x19   : > { %v220_v16 = vld [vmem:[%s219_s13] sm:$0xff]  ;;  %571 = vmatpush3.bf16.msra.mxu1 %v570_v17  ;;  %s480_s7 = sshll.u32 %s213_s6, 3  ;;  %s855_s13 = scalar_lea.hbm %s902_s5, %s486_s8 }
  0x1a   : > { %520 = vmatmul.mubr.msk.f32.vlgmr.msra.gmra.mrb[0].mxu0 %vm232_vm1, %v220_v16  ;;  %572 = vmatprep.subr.bf16.mxu1 %v697_v3  ;;  %s215_s9 = scalar_lea.vmem [#allocation2], %s480_s7  ;;  %s404_s14 = scalar_lea.sflag [#allocation3], %s213_s6 }
  0x1b   : > { %s417_s10 = sshll.u32 %s215_s9, 4  ;;  %s639_s17 = scalar_lea.vmem %s638_s16, 256  ;;  %s857_s10 = int_to_ptr.vmem [resolvable:$true] %s417_s10 }
  0x1c   : > { %s633_s15 = scalar_lea.vmem %s857_s10, 128  ;;  %p640_p0 = scmp.lt.s32.totalorder %s857_s10, %s638_s16 }
  0x1d   : > { %574 = vmatpush3.bf16.msra.mxu1 %v573_v20  ;;  %p634_p11 = scmp.ne.s32.totalorder %s857_s10, %s633_s15  ;;  %p641_p1 = scmp.lt.s32.totalorder %s639_s17, %s633_s15 }
  0x1e   : > { %575 = vmatprep.subr.bf16.mxu1 %v697_v3 }
  0x1f   : > { %p635_p12 = pnand %p634_p11, %p769_p5  ;;  %p642_p2 = por %p641_p1, %p640_p0 }
  0x21   : > { %577 = vmatpush3.bf16.msra.mxu1 %v576_v23  ;;  %p636_p13 = pneg %p635_p12 }
  0x22   : > { %578 = vmatprep.subr.bf16.mxu1 %v697_v3 }
  0x23   : > { %p643_p3 = pnand %p642_p2, %p636_p13 }
  0x25   : > { %580 = vmatpush3.bf16.msra.mxu1 %v579_v26 }
  0x26   : > { %581 = vmatprep.subr.bf16.mxu1 %v697_v3 }
  0x29   : > { %583 = vmatpush3.bf16.msra.mxu1 %v582_v29 }
  0x2a   : > { %584 = vmatprep.subr.bf16.mxu1 %v697_v3 }
  0x2d   : > { %586 = vmatpush3.bf16.msra.mxu1 %v585_v32 }
  0xed   : > { %v302_v34 = vpop.f32.mrb[0].mxu0 }
  0xee   : > { %v303_v35 = vadd.f32 %v482_v33, %v302_v34  ;;  %v521_v36 = vpop.f32.mrb[1].mxu0 }
  0xf0   : > { %629 = vtanh.f32 %v303_v35 }
  0xfa   : > { %v630_v37 = vpop.eup %629 }
  0xfb   : > { %555 = vmatmul.mubr.f32.vlgmr.msra.gmra.mrb[0].mxu1 %v630_v37 }
 0x1ce   : > { %v396_v39 = vpop.f32.mrb[0].mxu1 }
 0x1cf   : > { %v397_v40 = vadd.f32 %v484_v38, %v396_v39  ;;  %v556_v41 = vpop.f32.mrb[1].mxu1 }
 0x1d1   : > { %631 = vtanh.f32 %v397_v40 }
 0x1db   : > { %v632_v42 = vpop.eup %631 }
 0x1dc   : > { %402 = vst.msk [vmem:[%s215_s9] sm:$0xff] %vm401_vm2, %v632_v42 }
 0x1dd   : > { %646 = shalt.err (!%p643_p3)
}
 0x1de   : > { %s647_s23 = scalar_lea.hbm %s855_s13, 128  ;;  %s651_s30 = scalar_lea.hbm %s902_s5, 256 }
 0x1df   : > { %p648_p4 = scmp.ne.s32.totalorder %s855_s13, %s647_s23  ;;  %p652_p9 = scmp.lt.u32.totalorder %s855_s13, %s902_s5 }
 0x1e0   : > { %p653_p10 = scmp.lt.u32.totalorder %s651_s30, %s647_s23  ;;  %p655_p12 = scmp.lt.u32.totalorder %s647_s23, %s855_s13 }
 0x1e1   : > { %p649_p7 = pnand %p648_p4, %p769_p5 }
 0x1e2   : > { %p654_p11 = por %p653_p10, %p652_p9 }
 0x1e3   : > { %p650_p8 = pneg %p649_p7 }
 0x1e4   : > { %p656_p13 = por %p655_p12, %p654_p11 }
 0x1e6   : > { %p657_p0 = pnand %p656_p13, %p650_p8 }
 0x1e8   : > { %660 = shalt.err (!%p657_p0)
}
 0x1e9   : > { %587 = dma.vmem_to_hbm [thread:$0]  (%p769_p5), %s857_s10, 128, %s855_s13, %s404_s14  }
 0x1ea PF: > { %p593_p1 = scmp.ge.s32.totalorder %s695_s21, 2  ;;  %s429_s8 = sand.u32 1, %s683_s18  }
 0x1eb   : > { %s430_s9 = scalar_lea.sflag [#allocation3], %s429_s8 }
 0x1ec   : > { %p590_p2 = pnand %p593_p1, %p773_p6 }
 0x1ee   : > { %678 = dma.done.wait (!%p590_p2), %s430_s9, 128  }
 0x1ef   : > { %680 = vsyncadd (!%p590_p2), %s430_s9, 4294967168  ;;  %p15_p3 = scmp.ge.s32.totalorder %s756_s24, 4   ;;  %s905_s18 = smov %s687_s19 }
 0x1f0   : > { %s906_s19 = smov %s691_s20  ;;  %s907_s20 = smov %s767_s27 }
 0x1f1   : > { %s908_s21 = smov %s756_s24  ;;  %17 = sbr.rel (!%p15_p3) target bundleno = 3 (0x3), region = 75 }
 0x1f8   :  { %435 = vsyncpa [#allocation3], 1 }
 0x1f9   :  { %437 = vsyncpa [#allocation3 + $0x1], 1 }

</bundles_post_ra>
